<compile_context>
chip_gen: v7x
topology: tpu7x:2x2x1
jax: 0.10.0
libtpu: 0.0.40
codegen_flags: <defaults>
</compile_context>

<pallas_src>
import functools

import numpy as np
import jax
import jax.numpy as jnp
from jax import lax
from jax.experimental import pallas as pl
from jax.experimental.pallas import tpu as pltpu

NEG_BIG = -9000000000000000.0  # -9e15, same constant as the torch module


def _gat_head_kernel(x_ref, adj_ref, wt_ref, sel_ref, qb_ref, out_ref, hbuf,
                     *, alpha, activation, n, tb, f_in, use_bf16, approx_recip):
    """One grid step processes `tb` batch elements.  n (= N) must be even."""
    half = n // 2

    def mxu(lhs, rhs):
        if use_bf16:                       # optional bf16 MXU inputs (all gens)
            lhs = lhs.astype(jnp.bfloat16)
            rhs = rhs.astype(jnp.bfloat16)
        return jnp.dot(lhs, rhs, preferred_element_type=jnp.float32)

    # ---- one fused projection for all tb batches: columns [f0 | f1 | h | 0] --
    if tb == 1:
        x2 = x_ref[0]                                     # (N, F_in)
    else:
        x2 = x_ref[...].reshape(tb * n, f_in)             # (tb*N, F_in), N % 8 == 0
    hbuf[...] = mxu(x2, wt_ref[...])                      # (tb*N, F_pad) f32

    # tiny masks reused by every batch element (one vreg row each)
    right_cols = lax.broadcasted_iota(jnp.int32, (1, n), 1) >= half     # (1, N)
    even_rows = (lax.broadcasted_iota(jnp.int32, (n, 1), 0) & 1) == 0   # (N, 1)

    def body(b, carry):
        row0 = b * n
        if n % 8 == 0:
            row0 = pl.multiple_of(row0, n)
        hplus = hbuf[pl.ds(row0, n), :]                   # (N, F_pad)
        f0 = hplus[:, 0:1]                                # <a0, h_m>  (N, 1)
        f1 = hplus[:, 1:2]                                # <a1, h_m>  (N, 1)

        # -- even-N closed form of torch's cat(dim=1).view pairing ------------
        # top rows: e[i, j] = s[2i + (j >= N/2)] with s = f0 + f1
        s_col = f0 + f1
        s_eo = jnp.dot(sel_ref[...], s_col,
                       preferred_element_type=jnp.float32)       # (N,1) = [s_even; s_odd]
        e_top = jnp.where(jnp.broadcast_to(right_cols, (half, n)),
                          jnp.broadcast_to(s_eo[half:, :], (half, n)),
                          jnp.broadcast_to(s_eo[:half, :], (half, n)))

        # bottom rows: e[i, j] = f0[(2j)%N] + f1[(2j+1)%N]  (same for every i)
        u = jnp.where(even_rows, f0, f1)                  # u[m] = f0[m] (even) / f1[m]
        r_row = lax.dot_general(u, qb_ref[...], (((0,), (0,)), ((), ())),
                                preferred_element_type=jnp.float32)   # (1, N)
        e_bot = jnp.broadcast_to(r_row, (half, n))

        e = jnp.concatenate([e_top, e_bot], axis=0)       # (N, N)

        # LeakyReLU(alpha)
        if 0.0 <= alpha <= 1.0:
            e = jnp.maximum(e, alpha * e)
        else:
            e = jnp.where(e > 0, e, alpha * e)

        # adjacency mask -- reproduces torch's where(adj>0, e, -9e15) * adj
        # (masked logits become 0, the well-known "buggy" GAT masking pattern).
        adj = adj_ref[b].astype(jnp.float32)              # (N, N)
        att = jnp.where(adj > 0, e, NEG_BIG) * adj

        # softmax over dim=1 of (B, N, N)  ==  axis 0 of the per-batch matrix
        att = att - jnp.max(att, axis=0, keepdims=True)
        p = jnp.exp(att)
        inv = pl.reciprocal(jnp.sum(p, axis=0, keepdims=True), approx=approx_recip)
        att = p * inv

        hp = mxu(att, hplus)                              # (N, F_pad) on the MXU
        if activation:                                    # ELU
            hp = jnp.where(hp > 0, hp, jnp.exp(hp) - 1.0)
        out_ref[b] = hp.astype(out_ref.dtype)
        return carry

    if tb == 1:
        body(jnp.int32(0), 0)
    else:
        lax.fori_loop(0, tb, body, 0)


def _pick_batch_block(B, N, F_in, f_pad, adj_bytes, budget):
    """Largest divisor of B whose (double-buffered) per-step blocks fit the
    budget, capped so the grid keeps >= 4 steps (v7x has 2 TensorCores)."""
    if N % 8 != 0:
        return 1                      # keep the in-kernel (tb*N, F_in) reshape trivial
    cap = max(1, B // 4)
    best = 1
    for cand in range(1, B + 1):
        if cand > cap:
            break
        if B % cand:
            continue
        blk = 2 * cand * N * (4 * F_in + adj_bytes + 4 * f_pad)   # x + adj + out (2x buf)
        blk += 4 * cand * N * f_pad                               # projection scratch
        if blk > budget:
            break
        best = cand
        if cand * N >= 512:           # enough MXU rows; more only adds VMEM
            break
    return best


def gat_head_forward(x, adj, w_weight, a_weight, alpha=0.2, activation=True,
                     use_bf16_matmul=False, approx_softmax=False,
                     adj_dtype=jnp.bfloat16, block_batch=None):
    """x: (B, N, F_in) f32, adj: (B, N, N), w_weight: (F_out, F_in) (torch
    nn.Linear layout), a_weight: (1, 2*F_out).  adj is streamed in `adj_dtype`
    (bf16 default -- exact for 0/1 adjacency; pass jnp.float32 for weighted
    graphs)."""
    x = jnp.asarray(x, jnp.float32)
    adj = jnp.asarray(adj, jnp.float32)
    B, N, F_in = x.shape
    F_out = w_weight.shape[0]

    if N % 2 != 0:
        # TODO(synk): odd node counts fall back to the XLA path; the Pallas fast
        # path exploits the even-N block structure of the cat(dim=1) pairing.
        return gat_head_reference(x, adj, w_weight, a_weight, alpha=alpha,
                                  activation=activation)

    # ---- fold the attention vector into the projection ----------------------
    wt = jnp.asarray(w_weight, jnp.float32).T                      # (F_in, F_out)
    a_vec = jnp.asarray(a_weight, jnp.float32).reshape(2, F_out)   # [a0 ; a1]
    w0 = wt @ a_vec[0]                                             # (F_in,)
    w1 = wt @ a_vec[1]
    f_pad = 128 * (-(-(F_out + 2) // 128))                         # lane-dense width
    wt_ext = jnp.zeros((F_in, f_pad), jnp.float32)
    wt_ext = wt_ext.at[:, 0].set(w0).at[:, 1].set(w1)
    wt_ext = wt_ext.at[:, 2:2 + F_out].set(wt)

    # ---- host-precomputed 0/1 gather matrices (grid-invariant inputs) -------
    idx = np.arange(N)
    tgt = np.where(idx < N // 2, 2 * idx, 2 * (idx - N // 2) + 1)
    sel = (idx[None, :] == tgt[:, None]).astype(np.float32)        # (N, N) even/odd rows
    mm, jj = idx[:, None], idx[None, :]
    qb = ((mm == (2 * jj) % N) | (mm == (2 * jj + 1) % N)).astype(np.float32)

    adj_in = adj.astype(adj_dtype)
    adj_bytes = adj_in.dtype.itemsize

    try:                                                            # generation-aware budget
        vmem_cap = int(pltpu.get_tpu_info().vmem_capacity_bytes)
    except Exception:
        vmem_cap = 64 << 20
    budget = max(8 << 20, min(24 << 20, vmem_cap // 4))

    tb = block_batch if block_batch is not None else _pick_batch_block(
        B, N, F_in, f_pad, adj_bytes, budget)
    assert B % tb == 0, "block_batch must divide the batch size"

    blk_bytes = 2 * tb * N * (4 * F_in + adj_bytes + 4 * f_pad) + 4 * tb * N * f_pad
    const_bytes = 2 * 4 * (F_in * f_pad + 2 * N * N)
    vmem_limit = int(min(vmem_cap * 3 // 4,
                         max(32 << 20, blk_bytes + const_bytes + (8 << 20))))

    kernel = functools.partial(
        _gat_head_kernel, alpha=float(alpha), activation=bool(activation),
        n=N, tb=tb, f_in=F_in, use_bf16=bool(use_bf16_matmul),
        approx_recip=bool(approx_softmax))

    out_full = pl.pallas_call(
        kernel,
        out_shape=jax.ShapeDtypeStruct((B, N, f_pad), jnp.float32),
        grid_spec=pltpu.PrefetchScalarGridSpec(
            num_scalar_prefetch=0,
            grid=(B // tb,),
            in_specs=[
                pl.BlockSpec((tb, N, F_in), lambda g: (g, 0, 0)),   # x
                pl.BlockSpec((tb, N, N), lambda g: (g, 0, 0)),      # adj (bf16)
                pl.BlockSpec((F_in, f_pad), lambda g: (0, 0)),      # folded weights
                pl.BlockSpec((N, N), lambda g: (0, 0)),             # even/odd row gather
                pl.BlockSpec((N, N), lambda g: (0, 0)),             # bottom-row col gather
            ],
            out_specs=pl.BlockSpec((tb, N, f_pad), lambda g: (g, 0, 0)),
            scratch_shapes=[pltpu.VMEM((tb * N, f_pad), jnp.float32)],
        ),
        compiler_params=pltpu.CompilerParams(
            dimension_semantics=("parallel",),      # batch-parallel (dual TC on v7x)
            vmem_limit_bytes=vmem_limit),
    )(x, adj_in, wt_ext, jnp.asarray(sel), jnp.asarray(qb))

    return out_full[:, :, 2:2 + F_out]


def gat_head_reference(x, adj, w_weight, a_weight, alpha=0.2, activation=True):
    """Pure-JAX transliteration of the PyTorch forward (for verification)."""
    B, N, _ = adj.shape
    h = x @ jnp.asarray(w_weight, jnp.float32).T                 # (B, N, F_out)
    F_out = h.shape[-1]
    part1 = jnp.tile(h, (1, 1, N)).reshape(B, N * N, F_out)      # h.repeat(1,1,N).view
    part2 = jnp.tile(h, (1, N, 1))                               # h.repeat(1,N,1)
    a_input = jnp.concatenate([part1, part2], axis=1).reshape(B, N, N, 2 * F_out)
    e = jnp.squeeze(a_input @ jnp.asarray(a_weight, jnp.float32).T, axis=3)
    e = jnp.where(e > 0, e, alpha * e)                           # LeakyReLU
    att = jnp.where(adj > 0, e, NEG_BIG * jnp.ones_like(e))
    att = att * adj
    att = jax.nn.softmax(att, axis=1)
    hp = jnp.einsum('bij,bjf->bif', att, h)
    if activation:
        hp = jnp.where(hp > 0, hp, jnp.exp(hp) - 1.0)            # ELU
    return hp


if __name__ == "__main__":
    alpha = 0.2
    key = jax.random.PRNGKey(0)

    # ---- case 1: single-graph-per-step path (tb = 1) -----------------------
    B, N, F_in, F_out = 2, 8, 16, 32
    k1, k2, k3, k4, key = jax.random.split(key, 5)
    x = jax.random.normal(k1, (B, N, F_in), dtype=jnp.float32)
    adj = (jax.random.uniform(k2, (B, N, N)) > 0.4).astype(jnp.float32)
    w_weight = 0.1 * jax.random.normal(k3, (F_out, F_in), dtype=jnp.float32)   # W.weight
    a_weight = 0.1 * jax.random.normal(k4, (1, 2 * F_out), dtype=jnp.float32)  # a.weight

    out = jax.block_until_ready(
        gat_head_forward(x, adj, w_weight, a_weight, alpha=alpha, activation=True))
    ref = gat_head_reference(x, adj, w_weight, a_weight, alpha=alpha, activation=True)
    np.testing.assert_allclose(np.asarray(out), np.asarray(ref), rtol=1e-4, atol=1e-4)

    # ---- case 2: multi-graph-per-step path (tb = 2, fori_loop) -------------
    B2 = 8
    k1, k2, key = jax.random.split(key, 3)
    x2 = jax.random.normal(k1, (B2, N, F_in), dtype=jnp.float32)
    adj2 = (jax.random.uniform(k2, (B2, N, N)) > 0.4).astype(jnp.float32)
    out2 = jax.block_until_ready(
        gat_head_forward(x2, adj2, w_weight, a_weight, alpha=alpha,
                         activation=False, block_batch=2))
    ref2 = gat_head_reference(x2, adj2, w_weight, a_weight, alpha=alpha, activation=False)
    np.testing.assert_allclose(np.asarray(out2), np.asarray(ref2), rtol=1e-4, atol=1e-4)

    print("KERNEL_OK")
</pallas_src>

<mosaic_0001>
module attributes {stable_mosaic.version = 11 : i64} {
  func.func @_gat_head_kernel(%arg0: i32, %arg1: memref<1x8x16xf32, #tpu.memory_space<vmem>>, %arg2: memref<1x8x8xbf16, #tpu.memory_space<vmem>>, %arg3: memref<16x128xf32, #tpu.memory_space<vmem>>, %arg4: memref<8x8xf32, #tpu.memory_space<vmem>>, %arg5: memref<8x8xf32, #tpu.memory_space<vmem>>, %arg6: memref<1x8x128xf32, #tpu.memory_space<vmem>>, %arg7: memref<8x128xf32, #tpu.memory_space<vmem>>) attributes {dimension_semantics = [#tpu.dimension_semantics<parallel>], iteration_bounds = array<i64: 2>, scalar_prefetch = 0 : i64, scratch_operands = 1 : i64, tpu.core_type = #tpu.core_type<tc>, window_params = [{transform_indices = @transform_0, window_bounds = array<i64: 1, 8, 16>}, {transform_indices = @transform_1, window_bounds = array<i64: 1, 8, 8>}, {pipeline_mode = #tpu.pipeline_mode<synchronous>, transform_indices = @transform_2, window_bounds = array<i64: 16, 128>}, {pipeline_mode = #tpu.pipeline_mode<synchronous>, transform_indices = @transform_3, window_bounds = array<i64: 8, 8>}, {pipeline_mode = #tpu.pipeline_mode<synchronous>, transform_indices = @transform_4, window_bounds = array<i64: 8, 8>}, {transform_indices = @transform_5, window_bounds = array<i64: 1, 8, 128>}]} {
    %c0 = arith.constant 0 : index
    %c0_0 = arith.constant 0 : index
    %c0_1 = arith.constant 0 : index
    %0 = vector.load %arg1[%c0, %c0_0, %c0_1] : memref<1x8x16xf32, #tpu.memory_space<vmem>>, vector<1x8x16xf32>
    %1 = vector.shape_cast %0 : vector<1x8x16xf32> to vector<8x16xf32>
    %c0_2 = arith.constant 0 : index
    %c0_3 = arith.constant 0 : index
    %2 = vector.load %arg3[%c0_2, %c0_3] : memref<16x128xf32, #tpu.memory_space<vmem>>, vector<16x128xf32>
    %cst = arith.constant dense<0.000000e+00> : vector<8x128xf32>
    %3 = tpu.matmul %1, %2, %cst {dimension_numbers = #tpu.dot_dimension_numbers<[1], [0], [0], [1], [0, 0, 1, 1], [], []>} : vector<8x16xf32>, vector<16x128xf32>, vector<8x128xf32> -> vector<8x128xf32>
    %c0_4 = arith.constant 0 : index
    %c0_5 = arith.constant 0 : index
    %4 = vector.load %arg7[%c0_4, %c0_5] : memref<8x128xf32, #tpu.memory_space<vmem>>, vector<8x128xf32>
    tpu.vector_store %arg7[%c0_4, %c0_5], %3 {strides = array<i32>} : memref<8x128xf32, #tpu.memory_space<vmem>>, vector<8x128xf32>,
    %5 = tpu.iota {dimensions = array<i32: 1>} : vector<1x8xi32>
    %c4_i32 = arith.constant 4 : i32
    %6 = vector.broadcast %c4_i32 : i32 to vector<1x8xi32>
    %7 = arith.cmpi sge, %5, %6 : vector<1x8xi32>
    %8 = tpu.iota {dimensions = array<i32: 0>} : vector<8x1xi32>
    %c1_i32 = arith.constant 1 : i32
    %9 = vector.broadcast %c1_i32 : i32 to vector<8x1xi32>
    %10 = arith.andi %8, %9 : vector<8x1xi32>
    %c0_i32 = arith.constant 0 : i32
    %11 = vector.broadcast %c0_i32 : i32 to vector<8x1xi32>
    %12 = arith.cmpi eq, %10, %11 : vector<8x1xi32>
    %c0_i32_6 = arith.constant 0 : i32
    %c8_i32 = arith.constant 8 : i32
    %13 = arith.muli %c0_i32_6, %c8_i32 : i32
    %14 = tpu.assume_multiple %13, 8 : i32
    %15 = arith.index_cast %14 : i32 to index
    %c0_7 = arith.constant 0 : index
    %16 = vector.load %arg7[%15, %c0_7] : memref<8x128xf32, #tpu.memory_space<vmem>>, vector<8x128xf32>
    %17 = vector.extract_strided_slice %16 {offsets = [0, 0], sizes = [8, 1], strides = [1, 1]} : vector<8x128xf32> to vector<8x1xf32>
    %18 = vector.extract_strided_slice %16 {offsets = [0, 1], sizes = [8, 1], strides = [1, 1]} : vector<8x128xf32> to vector<8x1xf32>
    %19 = arith.addf %17, %18 : vector<8x1xf32>
    %c0_8 = arith.constant 0 : index
    %c0_9 = arith.constant 0 : index
    %20 = vector.load %arg4[%c0_8, %c0_9] : memref<8x8xf32, #tpu.memory_space<vmem>>, vector<8x8xf32>
    %cst_10 = arith.constant dense<0.000000e+00> : vector<8x1xf32>
    %21 = tpu.matmul %20, %19, %cst_10 {dimension_numbers = #tpu.dot_dimension_numbers<[1], [0], [0], [1], [0, 0, 1, 1], [], []>} : vector<8x8xf32>, vector<8x1xf32>, vector<8x1xf32> -> vector<8x1xf32>
    %22 = vector.shape_cast %7 : vector<1x8xi1> to vector<1x8xi1>
    %23 = vector.broadcast %22 : vector<1x8xi1> to vector<4x8xi1>
    %24 = vector.extract_strided_slice %21 {offsets = [4, 0], sizes = [4, 1], strides = [1, 1]} : vector<8x1xf32> to vector<4x1xf32>
    %25 = vector.shape_cast %24 : vector<4x1xf32> to vector<4x1xf32>
    %26 = vector.broadcast %25 : vector<4x1xf32> to vector<4x8xf32>
    %27 = vector.extract_strided_slice %21 {offsets = [0, 0], sizes = [4, 1], strides = [1, 1]} : vector<8x1xf32> to vector<4x1xf32>
    %28 = vector.shape_cast %27 : vector<4x1xf32> to vector<4x1xf32>
    %29 = vector.broadcast %28 : vector<4x1xf32> to vector<4x8xf32>
    %30 = arith.select %23, %26, %29 : vector<4x8xi1>, vector<4x8xf32>
    %31 = arith.select %12, %17, %18 : vector<8x1xi1>, vector<8x1xf32>
    %c0_11 = arith.constant 0 : index
    %c0_12 = arith.constant 0 : index
    %32 = vector.load %arg5[%c0_11, %c0_12] : memref<8x8xf32, #tpu.memory_space<vmem>>, vector<8x8xf32>
    %cst_13 = arith.constant dense<0.000000e+00> : vector<1x8xf32>
    %33 = tpu.matmul %31, %32, %cst_13 {dimension_numbers = #tpu.dot_dimension_numbers<[0], [0], [1], [1], [0, 1, 1, 1], [], []>} : vector<8x1xf32>, vector<8x8xf32>, vector<1x8xf32> -> vector<1x8xf32>
    %34 = vector.shape_cast %33 : vector<1x8xf32> to vector<1x8xf32>
    %35 = vector.broadcast %34 : vector<1x8xf32> to vector<4x8xf32>
    %36 = tpu.concatenate %30, %35 in 0 : vector<4x8xf32>, vector<4x8xf32> -> vector<8x8xf32>
    %cst_14 = arith.constant 2.000000e-01 : f32
    %37 = vector.broadcast %cst_14 : f32 to vector<8x8xf32>
    %38 = arith.mulf %37, %36 : vector<8x8xf32>
    %39 = arith.maximumf %36, %38 : vector<8x8xf32>
    %c0_15 = arith.constant 0 : index
    %c0_16 = arith.constant 0 : index
    %c0_17 = arith.constant 0 : index
    %40 = vector.load %arg2[%c0_15, %c0_16, %c0_17] : memref<1x8x8xbf16, #tpu.memory_space<vmem>>, vector<1x8x8xbf16>
    %41 = vector.shape_cast %40 : vector<1x8x8xbf16> to vector<8x8xbf16>
    %42 = arith.extf %41 : vector<8x8xbf16> to vector<8x8xf32>
    %cst_18 = arith.constant 0.000000e+00 : f32
    %43 = vector.broadcast %cst_18 : f32 to vector<8x8xf32>
    %44 = arith.cmpf ogt, %42, %43 : vector<8x8xf32>
    %cst_19 = arith.constant -9.000000e+15 : f32
    %45 = vector.broadcast %cst_19 : f32 to vector<8x8xf32>
    %46 = arith.select %44, %39, %45 : vector<8x8xi1>, vector<8x8xf32>
    %47 = arith.mulf %46, %42 : vector<8x8xf32>
    %cst_20 = arith.constant dense<0xFF800000> : vector<8xf32>
    %48 = vector.multi_reduction <maximumf>, %47, %cst_20 [0] : vector<8x8xf32> to vector<8xf32>
    %49 = vector.shape_cast %48 : vector<8xf32> to vector<1x8xf32>
    %50 = vector.broadcast %49 : vector<1x8xf32> to vector<8x8xf32>
    %51 = arith.subf %47, %50 : vector<8x8xf32>
    %52 = math.exp %51 : vector<8x8xf32>
    %cst_21 = arith.constant dense<0.000000e+00> : vector<8xf32>
    %53 = vector.multi_reduction <add>, %52, %cst_21 [0] : vector<8x8xf32> to vector<8xf32>
    %54 = vector.shape_cast %53 : vector<8xf32> to vector<1x8xf32>
    %55 = tpu.reciprocal %54 : vector<1x8xf32> -> vector<1x8xf32>
    %56 = vector.broadcast %55 : vector<1x8xf32> to vector<8x8xf32>
    %57 = arith.mulf %52, %56 : vector<8x8xf32>
    %cst_22 = arith.constant dense<0.000000e+00> : vector<8x128xf32>
    %58 = tpu.matmul %57, %16, %cst_22 {dimension_numbers = #tpu.dot_dimension_numbers<[1], [0], [0], [1], [0, 0, 1, 1], [], []>} : vector<8x8xf32>, vector<8x128xf32>, vector<8x128xf32> -> vector<8x128xf32>
    %cst_23 = arith.constant 0.000000e+00 : f32
    %59 = vector.broadcast %cst_23 : f32 to vector<8x128xf32>
    %60 = arith.cmpf ogt, %58, %59 : vector<8x128xf32>
    %61 = math.exp %58 : vector<8x128xf32>
    %cst_24 = arith.constant 1.000000e+00 : f32
    %62 = vector.broadcast %cst_24 : f32 to vector<8x128xf32>
    %63 = arith.subf %61, %62 : vector<8x128xf32>
    %64 = arith.select %60, %58, %63 : vector<8x128xi1>, vector<8x128xf32>
    %c0_25 = arith.constant 0 : index
    %c0_26 = arith.constant 0 : index
    %c0_27 = arith.constant 0 : index
    %65 = vector.load %arg6[%c0_25, %c0_26, %c0_27] : memref<1x8x128xf32, #tpu.memory_space<vmem>>, vector<1x8x128xf32>
    %66 = vector.shape_cast %65 : vector<1x8x128xf32> to vector<8x128xf32>
    %67 = vector.shape_cast %64 : vector<8x128xf32> to vector<1x8x128xf32>
    tpu.vector_store %arg6[%c0_25, %c0_26, %c0_27], %67 {strides = array<i32>} : memref<1x8x128xf32, #tpu.memory_space<vmem>>, vector<1x8x128xf32>,
    return
  }
  func.func @transform_0(%arg0: i32) -> (i32, i32, i32) {
    %c0_i32 = arith.constant 0 : i32
    %c0_i32_0 = arith.constant 0 : i32
    %c0_i32_1 = arith.constant 0 : i32
    return %arg0, %c0_i32, %c0_i32_0 : i32, i32, i32
  }
  func.func @transform_1(%arg0: i32) -> (i32, i32, i32) {
    %c0_i32 = arith.constant 0 : i32
    %c0_i32_0 = arith.constant 0 : i32
    %c0_i32_1 = arith.constant 0 : i32
    return %arg0, %c0_i32, %c0_i32_0 : i32, i32, i32
  }
  func.func @transform_2(%arg0: i32) -> (i32, i32) {
    %c0_i32 = arith.constant 0 : i32
    %c0_i32_0 = arith.constant 0 : i32
    %c0_i32_1 = arith.constant 0 : i32
    return %c0_i32, %c0_i32_0 : i32, i32
  }
  func.func @transform_3(%arg0: i32) -> (i32, i32) {
    %c0_i32 = arith.constant 0 : i32
    %c0_i32_0 = arith.constant 0 : i32
    %c0_i32_1 = arith.constant 0 : i32
    return %c0_i32, %c0_i32_0 : i32, i32
  }
  func.func @transform_4(%arg0: i32) -> (i32, i32) {
    %c0_i32 = arith.constant 0 : i32
    %c0_i32_0 = arith.constant 0 : i32
    %c0_i32_1 = arith.constant 0 : i32
    return %c0_i32, %c0_i32_0 : i32, i32
  }
  func.func @transform_5(%arg0: i32) -> (i32, i32, i32) {
    %c0_i32 = arith.constant 0 : i32
    %c0_i32_0 = arith.constant 0 : i32
    %c0_i32_1 = arith.constant 0 : i32
    return %arg0, %c0_i32, %c0_i32_0 : i32, i32, i32
  }
}

</mosaic_0001>

<bundles_post_ra>
// kernel: tpu_custom_call.1
= control target key start
LH: loop header
LB: loop body
LE: loop exit
PB: predicated region body
PF: predicated region fallthrough
CT: control target
= control target key end

     0   :  { %s1503_s0 = inlined_call_operand.hbm [shape: f32[2,8,16], index: 0, kind: input, shape index: {}]   ;;  %s1504_s1 = inlined_call_operand.hbm [shape: bf16[2,8,8], index: 1, kind: input, shape index: {}]   ;;  %s1505_s2 = inlined_call_operand.hbm [shape: f32[16,128], index: 2, kind: input, shape index: {}]   ;;  %s1506_s3 = inlined_call_operand.vmem [shape: f32[8,8], index: 3, kind: input, shape index: {}]   ;;  %s1507_s4 = inlined_call_operand.hbm [shape: f32[8,8], index: 4, kind: input, shape index: {}]   ;;  %s1508_s5 = inlined_call_operand.hbm [shape: f32[2,8,128], index: 5, kind: output, shape index: {}]  }
   0x1   :  { %1513 = sst [smem:[#allocation17_spill]] %s1503_s0 }
   0x2   :  { %10 = vsyncpa [#allocation4], 0 }
   0x3   :  { %12 = vsyncpa [#allocation4 + $0x1], 0 }
   0x4   :  { %13 = vsyncpa [#allocation7], 0 }
   0x5   :  { %15 = vsyncpa [#allocation7 + $0x1], 0 }
   0x6   :  { %16 = vsyncpa [#allocation10], 0 }
   0x7   :  { %17 = vsyncpa [#allocation5], 0 }
   0x8   :  { %19 = vsyncpa [#allocation5 + $0x1], 0  ;;  %s1210_s18 = smov 0   ;;  %s1212_s19 = smov 0  }
   0x9   :  { %s1214_s20 = smov 0   ;;  %s1216_s21 = smov 0  }
   0xa LB: > { %s1231_s22 = sadd.s32 4294967295, %s1166_s21   ;;  %s827_s23 = sadd.s32 4294967294, %s1166_s21   ;;  %s1166_s21 = sphi %s1216_s21, %s1534_s21   ;;  %s1162_s20 = sphi %s1214_s20, %s1533_s20   ;;  %s1158_s19 = sphi %s1212_s19, %s1532_s19   ;;  %s1154_s18 = sphi %s1210_s18, %s1531_s18  }
   0xb   : > { %p45_p0 = scmp.ne.s32.totalorder %s1158_s19, %s1154_s18  ;;  %p1509_p1 = scmp.eq.s32.totalorder %s1231_s22, 0 }
   0xc   : > { %p164_p3 = scmp.eq.s32.totalorder %s827_s23, 1  ;;  %p828_p5 = scmp.ge.s32.totalorder %s1166_s21, 1 }
   0xd   : > { %p1240_p4 = por %p1509_p1, %p45_p0  ;;  %p171_p7 = scmp.lt.s32.totalorder %s1166_s21, 3 }
   0xe   : > { %p1245_p6 = por %p164_p3, %p45_p0  ;;  %s1168_s27 = smov [#allocation8]  }
   0xf   : > { %s1514_s24 = scalar_select %p1240_p4, 1, 0 }
  0x10   : > { %s1515_s25 = scalar_select %p1245_p6, 1, 0 }
  0x11   : > { %p1250_p8 = pnand %p828_p5, %p171_p7  ;;  %s183_s28 = sshll.u32 %s1168_s27, 4  ;;  %s1254_s28 = int_to_ptr.vmem [resolvable:$true] %s183_s28 }
  0x12   : > { %s1169_s30 = smov [#allocation9]   ;;  %s972_s9 = scalar_lea.hbm %s1505_s2, 256 }
  0x13   : > { %s1516_s26 = scalar_select %p1250_p8, 1, 0 }
  0x14   : > { %p899_p9 = pneg %p1250_p8  ;;  %s200_s6 = sshll.u32 %s1169_s30, 4  ;;  %s1265_s6 = int_to_ptr.vmem [resolvable:$true] %s200_s6 }
  0x15   : > { %p973_p12 = scmp.ne.s32.totalorder %s1505_s2, %s972_s9  ;;  %p979_p5 = scmp.lt.u32.totalorder %s972_s9, %s1505_s2 }
  0x16   : > { %p1261_p11 = pnand %p899_p9, %p1509_p1 }
  0x18   : > { %p974_p13 = pneg %p1261_p11 }
  0x1a   : > { %p975_p0 = pnand %p974_p13, %p973_p12 }
  0x1c   : > { %p976_p3 = pneg %p975_p0 }
  0x1e   : > { %p981_p7 = pnand %p979_p5, %p976_p3 }
  0x20   : > { %984 = shalt.err (!%p981_p7)
}
  0x21   : > { %s985_s14 = scalar_lea.vmem %s1254_s28, 256  ;;  %p993_p2 = scmp.lt.s32.totalorder %s1254_s28, %s1254_s28 }
  0x22   : > { %p986_p9 = scmp.ne.s32.totalorder %s1254_s28, %s985_s14  ;;  %p994_p12 = scmp.lt.s32.totalorder %s985_s14, %s985_s14 }
  0x24   : > { %p988_p10 = pnand %p986_p9, %p974_p13  ;;  %p995_p0 = por %p994_p12, %p993_p2 }
  0x26   : > { %p989_p1 = pneg %p988_p10 }
  0x28   : > { %p996_p6 = pnand %p995_p0, %p989_p1 }
  0x2a   : > { %999 = shalt.err (!%p996_p6)
}
  0x2b   : > { %s1170_s15 = smov 128   ;;  %s1171_s16 = smov 8  }
  0x2c   : > { %902 = dma.hbm_to_vmem [thread:$0]  (!%p1261_p11), %s1505_s2, 256, %s1254_s28, [#allocation7], %s1170_s15, %s1170_s15, %s1171_s16  }
  0x2d   : > { %s1000_s7 = scalar_lea.hbm %s1507_s4, 128 }
  0x2e   : > { %p1001_p2 = scmp.ne.s32.totalorder %s1507_s4, %s1000_s7  ;;  %p1007_p10 = scmp.lt.u32.totalorder %s1000_s7, %s1507_s4 }
  0x30   : > { %p1003_p1 = pnand %p1001_p2, %p974_p13 }
  0x32   : > { %p1004_p6 = pneg %p1003_p1 }
  0x34   : > { %p1009_p3 = pnand %p1007_p10, %p1004_p6 }
  0x36   : > { %1012 = shalt.err (!%p1009_p3)
}
  0x37   : > { %s1013_s28 = scalar_lea.vmem %s1265_s6, 128  ;;  %p1021_p12 = scmp.lt.s32.totalorder %s1265_s6, %s1265_s6 }
  0x38   : > { %p1014_p5 = scmp.ne.s32.totalorder %s1265_s6, %s1013_s28  ;;  %p1022_p0 = scmp.lt.s32.totalorder %s1013_s28, %s1013_s28 }
  0x3a   : > { %p1016_p7 = pnand %p1014_p5, %p974_p13  ;;  %p1023_p2 = por %p1022_p0, %p1021_p12 }
  0x3c   : > { %p1017_p9 = pneg %p1016_p7 }
  0x3e   : > { %p1024_p1 = pnand %p1023_p2, %p1017_p9 }
  0x40   : > { %1027 = shalt.err (!%p1024_p1)
}
  0x41   : > { %905 = dma.hbm_to_vmem [thread:$0]  (!%p1261_p11), %s1507_s4, 128, %s1265_s6, [#allocation10]  }
  0x42   : > { %s1320_s14 = sadd.s32 1, %s1166_s21   ;;  %s32_s29 = sadd.s32 1, %s1162_s20 }
  0x43   : > { %s29_s15 = ssub.s32 %s1166_s21, %s1320_s14  ;;  %p39_p13 = scmp.ne.s32.totalorder %s1162_s20, %s1158_s19 }
  0x44   : > { %p30_p6 = scmp.eq.s32.totalorder %s29_s15, 0  ;;  %p40_p10 = scmp.eq.s32.totalorder %s1166_s21, 0 }
  0x45   : > { %p1518_p3 = scmp.eq.s32.totalorder %s1231_s22, 1  ;;  %p919_p7 = scmp.lt.s32.totalorder %s1166_s21, 2 }
  0x46   : > { %s1336_s17 = scalar_select %p30_p6, %s1162_s20, %s32_s29  }
  0x47   : > { %p1330_p5 = por %p1518_p3, %p39_p13  ;;  %p41_p9 = por %p40_p10, %p39_p13 }
  0x48   : > { %s1339_s23 = sand.u32 1, %s1162_s20   ;;  %s833_s27 = sshll.u32 %s1166_s21, 7 }
  0x49   : > { %s1519_s16 = scalar_select %p1330_p5, 1, 0 }
  0x4a   : > { %s832_s6 = sshll.u32 %s1339_s23, 3  ;;  %s1520_s0 = sld [smem:[#allocation17_spill]] }
  0x4b   : > { %s215_s9 = scalar_lea.vmem [#allocation3], %s832_s6  ;;  %p1350_p11 = pnand %p919_p7, %p41_p9 }
  0x4c   : > { %s222_s10 = sshll.u32 %s215_s9, 4  ;;  %s229_s28 = sand.u32 1, %s1166_s21   ;;  %s1348_s10 = int_to_ptr.vmem [resolvable:$true] %s222_s10 }
  0x4d   : > { %s834_s12 = sshll.u32 %s1339_s23, 2  ;;  %s212_s13 = scalar_lea.sflag [#allocation4], %s1339_s23 }
  0x4e   : > { %p1030_p0 = pneg %p1350_p11 }
  0x50   : > { %s1346_s8 = scalar_lea.hbm %s1520_s0, %s833_s27  ;;  %s1033_s27 = scalar_lea.hbm %s1520_s0, 256 }
  0x51   : > { %s1028_s29 = scalar_lea.hbm %s1346_s8, 128  ;;  %p1034_p13 = scmp.lt.u32.totalorder %s1346_s8, %s1520_s0 }
  0x52   : > { %p1029_p12 = scmp.ne.s32.totalorder %s1346_s8, %s1028_s29  ;;  %p1035_p6 = scmp.lt.u32.totalorder %s1033_s27, %s1028_s29 }
  0x53   : > { %p1037_p3 = scmp.lt.u32.totalorder %s1028_s29, %s1346_s8 }
  0x54   : > { %p1031_p2 = pnand %p1030_p0, %p1029_p12  ;;  %p1036_p10 = por %p1035_p6, %p1034_p13 }
  0x56   : > { %p1032_p1 = pneg %p1031_p2  ;;  %p1038_p7 = por %p1037_p3, %p1036_p10 }
  0x58   : > { %p1039_p9 = pnand %p1038_p7, %p1032_p1 }
  0x5a   : > { %1042 = shalt.err (!%p1039_p9)
}
  0x5b   : > { %s1043_s9 = scalar_lea.vmem %s1348_s10, 128  ;;  %s1172_s15 = smov [#allocation3]  }
  0x5c   : > { %p1044_p12 = scmp.ne.s32.totalorder %s1348_s10, %s1043_s9  ;;  %s1048_s6 = sshll.u32 %s1172_s15, 4  ;;  %s1049_s6 = int_to_ptr.vmem [resolvable:$false] %s1048_s6 }
  0x5d   : > { %s1050_s30 = scalar_lea.vmem %s1049_s6, 256  ;;  %p1051_p4 = scmp.lt.s32.totalorder %s1348_s10, %s1049_s6 }
  0x5e   : > { %p1046_p2 = pnand %p1044_p12, %p1030_p0  ;;  %p1052_p13 = scmp.lt.s32.totalorder %s1050_s30, %s1043_s9 }
  0x60   : > { %p1047_p5 = pneg %p1046_p2  ;;  %p1053_p6 = por %p1052_p13, %p1051_p4 }
  0x62   : > { %p1054_p10 = pnand %p1053_p6, %p1047_p5 }
  0x64   : > { %1057 = shalt.err (!%p1054_p10)
}
  0x65   : > { %909 = dma.hbm_to_vmem [thread:$0]  (!%p1350_p11), %s1346_s8, 128, %s1348_s10, %s212_s13  }
  0x66   : > { %s835_s29 = sshll.u32 %s1166_s21, 6  ;;  %s233_s9 = scalar_lea.vmem [#allocation6], %s834_s12 }
  0x67   : > { %s1386_s15 = scalar_lea.hbm %s1504_s1, %s835_s29  ;;  %s240_s6 = sshll.u32 %s233_s9, 4  ;;  %s241_s6 = int_to_ptr.vmem [resolvable:$true] %s240_s6 }
  0x68   : > { %s230_s30 = scalar_lea.sflag [#allocation7], %s229_s28  ;;  %s1058_s0 = scalar_lea.hbm %s1386_s15, 64 }
  0x69   : > { %p1059_p4 = scmp.ne.s32.totalorder %s1386_s15, %s1058_s0  ;;  %s1063_s13 = scalar_lea.hbm %s1504_s1, 128 }
  0x6a   : > { %p1064_p3 = scmp.lt.u32.totalorder %s1386_s15, %s1504_s1  ;;  %p1065_p7 = scmp.lt.u32.totalorder %s1063_s13, %s1058_s0 }
  0x6b   : > { %p1061_p5 = pnand %p1059_p4, %p1030_p0  ;;  %p1067_p12 = scmp.lt.u32.totalorder %s1058_s0, %s1386_s15 }
  0x6c   : > { %p1066_p9 = por %p1065_p7, %p1064_p3 }
  0x6d   : > { %p1062_p1 = pneg %p1061_p5 }
  0x6e   : > { %p1068_p2 = por %p1067_p12, %p1066_p9 }
  0x70   : > { %p1069_p13 = pnand %p1068_p2, %p1062_p1 }
  0x72   : > { %1072 = shalt.err (!%p1069_p13)
}
  0x73   : > { %s1073_s28 = scalar_lea.vmem %s241_s6, 64  ;;  %s1173_s12 = smov [#allocation6]  }
  0x74   : > { %p1074_p6 = scmp.ne.s32.totalorder %s241_s6, %s1073_s28  ;;  %s1078_s27 = sshll.u32 %s1173_s12, 4  ;;  %s1079_s27 = int_to_ptr.vmem [resolvable:$false] %s1078_s27 }
  0x75   : > { %s1080_s7 = scalar_lea.vmem %s1079_s27, 128  ;;  %p1081_p5 = scmp.lt.s32.totalorder %s241_s6, %s1079_s27 }
  0x76   : > { %p1076_p10 = pnand %p1074_p6, %p1030_p0  ;;  %p1082_p8 = scmp.lt.s32.totalorder %s1080_s7, %s1073_s28 }
  0x78   : > { %p1077_p4 = pneg %p1076_p10  ;;  %p1083_p3 = por %p1082_p8, %p1081_p5 }
  0x7a   : > { %p1084_p7 = pnand %p1083_p3, %p1077_p4 }
  0x7c   : > { %1087 = shalt.err (!%p1084_p7)
}
  0x7d   : > { %912 = dma.hbm_to_vmem [thread:$0]  (!%p1350_p11), %s1386_s15, 64, %s241_s6, %s230_s30  }
  0x7e   : > { %p1522_p1 = scmp.ne.s32.totalorder %s1516_s26, 0 }
  0x7f   : > { %s1414_s0 = sand.u32 (!%p1522_p1), 1, %s1158_s19   ;;  %p1523_p8 = scmp.ne.s32.totalorder (!%p1522_p1), %s1514_s24, 0 }
  0x80   : > { %249 = sbr.rel (%p1522_p1) target bundleno = 1132 (0x46c), region = 40  ;;  %s837_s9 = sshll.u32 (!%p1522_p1), %s1414_s0, 3 }
  0x81   : > { %s252_s8 = scalar_lea.sflag (!%p1522_p1), [#allocation4], %s1414_s0  ;;  %s255_s10 = scalar_lea.vmem (!%p1522_p1), [#allocation3], %s837_s9 }
  0x87   : > { %1133 = dma.done.wait (%p1523_p8), %s252_s8, 128  }
  0x88   : > { %1135 = vsyncadd (%p1523_p8), %s252_s8, 4294967168  ;;  %s260_s26 = sand.u32 1, %s1231_s22   ;;  %s838_s11 = sshll.u32 %s1414_s0, 2 }
  0x89   : > { %s261_s15 = scalar_lea.sflag [#allocation7], %s260_s26  ;;  %s1426_s6 = scalar_lea.vmem [#allocation6], %s838_s11 }
  0x8a   : > { %1137 = dma.done.wait (%p1523_p8), %s261_s15, 64  }
  0x8b   : > { %1139 = vsyncadd (%p1523_p8), %s261_s15, 4294967232  ;;  %p1524_p11 = scmp.eq.s32.totalorder %s1231_s22, 0 }
  0x8d   : > { %1141 = dma.done.wait (%p1524_p11), [#allocation7], 256   ;;  %p1525_p0 = pmov %p1524_p11 }
  0x8f   : > { %1143 = vsyncadd (%p1525_p0), [#allocation7], 4294967040  ;;  %p1526_p9 = pmov %p1525_p0 }
  0x90   : > { %p1527_p12 = pmov %p1525_p0 }
  0x91   : > { %1145 = dma.done.wait (%p1526_p9), [#allocation10], 128  }
  0x92   : > { %1147 = vsyncadd (%p1527_p12), [#allocation10], 4294967168  ;;  %v1174_v0 = vmov 0.0|0.0   ;;  %vm1175_vm0 = vmmov 0   ;;  %v1176_v1 = vmov 0.0   ;;  %v305_v2 = vld [vmem:[#allocation8] sm:$0xff]  ;;  %v382_v8 = vlaneseq }
  0x93   : > { %882 = vmatprep.subr.bf16.mxu0 %v1174_v0  ;;  %864 = vmatprep.mubr.msk.f32.mxu0 %vm1175_vm0, %v1176_v1  ;;  %v306_v3 = vld [vmem:[#allocation8 + $0x8] sm:$0xff]  ;;  %vm307_vm1 = vcmask 130048   ;;  %s1177_s24 = smov 127   ;;  %vm396_vm3 = vcmask 64512   ;;  %v481_v15 = vld [vmem:[#allocation9] sm:$0xff]  ;;  %v1178_v16 = vmov 0  }
  0x94   : > { %867 = vmatprep.subr.mxu1 %v1176_v1  ;;  %869 = vmatprep.mubr.msk.f32.mxu1 %vm1175_vm0, %v1176_v1  ;;  %v883_v4 = vpack.c.bf16 %v306_v3, %v305_v2  ;;  %v304_v5 = vld [vmem:[%s255_s10] sm:$0xff]  ;;  %v386_v9 = vshrl.u32 %v382_v8, 7  ;;  %v383_v20 = vand.u32 127, %v382_v8  ;;  %v598_v26 = vld [vmem:[%s1426_s6] sm:$0xf]  ;;  %vm594_vm5 = vcmask 1043456  }
  0x95   : > { %v395_v14 = vld [vmem:[%s1506_s3] sm:$0xff]  ;;  %964 = vset.pattern.permute.xlu1 %v1178_v16  ;;  %v599_v30 = vunpack.c.l.bf16 %v598_v26  ;;  %s848_s23 = sshll.u32 %s1231_s22, 7  ;;  %s303_s29 = scalar_lea.vmem [#allocation11], %s837_s9 }
  0x96   : > { %884 = vmatpush3.bf16.msra.mxu0 %v883_v4  ;;  %v387_v10 = vand.u32 1, %v386_v9  ;;  %v589_v21 = vsub.s32 0, %v386_v9  ;;  %vm384_vm4 = vcmp.ge.s32.totalorder %v383_v20, 4  ;;  %s715_s28 = sshll.u32 %s303_s29, 4  ;;  %s1459_s7 = scalar_lea.hbm %s1508_s5, %s848_s23  ;;  %s1461_s28 = int_to_ptr.vmem [resolvable:$true] %s715_s28 }
  0x97   : > { %877 = vmatprep.subr.mxu0 %v1176_v1  ;;  %vm600_vm6 = vcmp.gt.f32.partialorder %v599_v30, 0.0  ;;  %s702_s8 = scalar_lea.sflag [#allocation5], %s1414_s0  ;;  %s1088_s22 = scalar_lea.vmem %s1461_s28, 128 }
  0x98   : > { %vm388_vm2 = vcmp.eq.s32.totalorder %v387_v10, 0  ;;  %p1089_p2 = scmp.ne.s32.totalorder %s1461_s28, %s1088_s22  ;;  %p1528_p13 = scmp.ne.s32.totalorder %s1519_s16, 0 }
  0x99   : > { %865 = vmatmul.mubr.msk.f32.vlgmr.msra.gmra.mrb[0].mxu0 %vm307_vm1, %v304_v5  ;;  %s1179_s9 = smov [#allocation11]  }
  0x9a   : > { %879 = vmatprep.mubr.msk.f32.mxu0 %vm1175_vm0, %v1176_v1  ;;  %p1090_p6 = pnand %p1089_p2, %p1528_p13  ;;  %s1092_s10 = sshll.u32 %s1179_s9, 4  ;;  %s1093_s10 = int_to_ptr.vmem [resolvable:$false] %s1092_s10 }
  0x9b   : > { %s1094_s26 = scalar_lea.vmem %s1093_s10, 256  ;;  %p1095_p4 = scmp.lt.s32.totalorder %s1461_s28, %s1093_s10 }
  0x9c   : > { %p1091_p10 = pneg %p1090_p6  ;;  %p1096_p5 = scmp.lt.s32.totalorder %s1094_s26, %s1088_s22 }
  0x9e   : > { %p1097_p3 = por %p1096_p5, %p1095_p4 }
  0xa0   : > { %p1098_p7 = pnand %p1097_p3, %p1091_p10 }
 0x16c   : > { %v377_v6 = vpop.f32.mrb[0].mxu0 }
 0x16d   : > { %391 = vrot.lane.b32.xlu0 %v377_v6, %s1177_s24  ;;  %v866_v7 = vpop.f32.mrb[1].mxu0  ;;  %878 = vmatpush3.msra.mxu0 %v377_v6 }
 0x1df   : > { %v392_v11 = vpop.permute.xlu0 %391 }
 0x1e0   : > { %v480_v12 = vsel %vm388_vm2, %v377_v6, %v392_v11  ;;  %v394_v13 = vadd.f32 %v392_v11, %v377_v6 }
 0x1e1   : > { %482 = vxpose.xlu0.b32.start.end [1/1] (short) (narrow) %v480_v12, 8 }
 0x1e2   : > { %868 = vmatpush3.msra.mxu1 %v394_v13 }
 0x1e3   : > { %870 = vmatmul.mubr.msk.f32.vlgmr.msra.gmra.mrb[0].mxu1 %vm396_vm3, %v395_v14  ;;  %872 = vmatprep.subr.mxu1 %v1176_v1 }
 0x1e4   : > { %873 = vmatpush3.msra.mxu1 %v481_v15  ;;  %874 = vmatprep.mubr.msk.f32.mxu1 %vm1175_vm0, %v1176_v1 }
 0x20a   : > { %965 = vset.pattern.permute.xlu0 %v1178_v16 }
 0x261   : > { %v498_v17 = vpop.trf.xlu0 }
 0x262   : > { %875 = vmatmul.mubr.msk.f32.vlgmr.msra.gmra.mrb[2].mxu1 %vm396_vm3, %v498_v17 }
 0x2b6   : > { %v466_v18 = vpop.f32.mrb[0].mxu1 }
 0x2b7   : > { %474 = vperm.xlu1 %964, %v466_v18   ;;  %v871_v19 = vpop.f32.mrb[1].mxu1 }
 0x335   : > { %v583_v22 = vpop.f32.mrb[2].mxu1 }
 0x336   : > { %v475_v23 = vpop.permute.xlu1 %474  ;;  %v876_v24 = vpop.f32.mrb[3].mxu1  ;;  %v590_v27 = vrot.slane %v583_v22, %v589_v21 }
 0x337   : > { %v477_v25 = vrot.slane %v475_v23, 4 }
 0x339   : > { %v479_v28 = vsel %vm384_vm4, %v475_v23, %v477_v25 }
 0x33a   : > { %v592_v29 = vrot.slane %v479_v28, 4 }
 0x33c   : > { %v595_v31 = vsel %vm594_vm5, %v592_v29, %v590_v27 }
 0x33d   : > { %v596_v32 = vmul.f32 0.2, %v595_v31 }
 0x33f   : > { %v597_v33 = vmax.f32 %v595_v31, %v596_v32 }
 0x341   : > { %v601_v34 = vsel %vm600_vm6, %v597_v33, -9e+15 }
 0x342   : > { %v602_v35 = vmul.f32 %v601_v34, %v599_v30 }
 0x344   : > { %v603_v36 = vsel %vm396_vm3, %v602_v35, -inf }
 0x345   : > { %v604_v37 = vrot.slane %v603_v36, 4 }
 0x347   : > { %v605_v38 = vmax.f32 %v603_v36, %v604_v37 }
 0x349   : > { %v606_v39 = vrot.slane %v605_v38, 2 }
 0x34b   : > { %v607_v40 = vmax.f32 %v605_v38, %v606_v39 }
 0x34d   : > { %v608_v41 = vrot.slane %v607_v40, 1 }
 0x34f   : > { %v609_v42 = vmax.f32 %v607_v40, %v608_v41 }
 0x351   : > { %v610_v43 = vsub.f32 %v602_v35, %v609_v42 }
 0x353   : > { %v611_v44 = vmul.f32 1.442695, %v610_v43 }
 0x355   : > { %966 = vpow2.f32 %v611_v44 }
 0x35f   : > { %v967_v45 = vpop.eup %966 }
 0x360   : > { %v613_v46 = vsel %vm396_vm3, %v967_v45, 0.0 }
 0x361   : > { %v614_v47 = vrot.slane %v613_v46, 4 }
 0x363   : > { %v615_v48 = vadd.f32 %v614_v47, %v613_v46 }
 0x365   : > { %v616_v49 = vrot.slane %v615_v48, 2 }
 0x367   : > { %v617_v50 = vadd.f32 %v616_v49, %v615_v48 }
 0x369   : > { %v618_v51 = vrot.slane %v617_v50, 1 }
 0x36b   : > { %v619_v52 = vadd.f32 %v618_v51, %v617_v50 }
 0x36d   : > { %968 = vrcp.f32 %v619_v52 }
 0x377   : > { %v969_v53 = vpop.eup %968 }
 0x378   : > { %v621_v54 = vmul.f32 %v969_v53, %v967_v45 }
 0x37a   : > { %880 = vmatmul.mubr.msk.f32.vlgmr.msra.gmra.mrb[2].mxu0 %vm396_vm3, %v621_v54 }
 0x44d   : > { %v691_v55 = vpop.f32.mrb[2].mxu0 }
 0x44e   : > { %v696_v56 = vmul.f32 1.442695, %v691_v55  ;;  %v881_v57 = vpop.f32.mrb[3].mxu0  ;;  %vm695_vm7 = vcmp.gt.f32.partialorder %v691_v55, 0.0 }
 0x450   : > { %970 = vpow2.f32 %v696_v56 }
 0x45a   : > { %v971_v58 = vpop.eup %970 }
 0x45b   : > { %v846_v59 = vadd.f32 -1.0, %v971_v58 }
 0x45d   : > { %v699_v60 = vsel %vm695_vm7, %v691_v55, %v846_v59 }
 0x45e   : > { %700 = vst [vmem:[%s303_s29] sm:$0xff] %v699_v60 }
 0x45f   : > { %1101 = shalt.err (!%p1098_p7)
}
 0x460   : > { %s1102_s0 = scalar_lea.hbm %s1459_s7, 128  ;;  %s1106_s6 = scalar_lea.hbm %s1508_s5, 256 }
 0x461   : > { %p1103_p1 = scmp.ne.s32.totalorder %s1459_s7, %s1102_s0  ;;  %p1107_p0 = scmp.lt.u32.totalorder %s1459_s7, %s1508_s5 }
 0x462   : > { %p1108_p9 = scmp.lt.u32.totalorder %s1106_s6, %s1102_s0  ;;  %p1110_p2 = scmp.lt.u32.totalorder %s1102_s0, %s1459_s7 }
 0x463   : > { %p1104_p8 = pnand %p1103_p1, %p1528_p13 }
 0x464   : > { %p1109_p12 = por %p1108_p9, %p1107_p0 }
 0x465   : > { %p1105_p11 = pneg %p1104_p8 }
 0x466   : > { %p1111_p6 = por %p1110_p2, %p1109_p12 }
 0x468   : > { %p1112_p10 = pnand %p1111_p6, %p1105_p11 }
 0x46a   : > { %1115 = shalt.err (!%p1112_p10)
}
 0x46b   : > { %897 = dma.vmem_to_hbm [thread:$0]  (%p1528_p13), %s1461_s28, 128, %s1459_s7, %s702_s8  }
 0x46c PF: > { %s727_s13 = sand.u32 1, %s1154_s18   ;;  %p1529_p4 = scmp.ne.s32.totalorder %s1515_s25, 0 }
 0x46d   : > { %p1530_p5 = scmp.ge.s32.totalorder %s1166_s21, 2  ;;  %s728_s23 = scalar_lea.sflag [#allocation5], %s727_s13 }
 0x46f   : > { %p914_p3 = pnand %p1530_p5, %p1529_p4 }
 0x471   : > { %1149 = dma.done.wait (!%p914_p3), %s728_s23, 128  }
 0x472   : > { %1151 = vsyncadd (!%p914_p3), %s728_s23, 4294967168  ;;  %p22_p7 = scmp.ge.s32.totalorder %s1320_s14, 4   ;;  %s1531_s18 = smov %s1158_s19 }
 0x473   : > { %s1532_s19 = smov %s1162_s20  ;;  %s1533_s20 = smov %s1336_s17 }
 0x474   : > { %s1534_s21 = smov %s1320_s14  ;;  %24 = sbr.rel (!%p22_p7) target bundleno = 10 (0xa), region = 106 }
 0x47b   :  { %733 = vsyncpa [#allocation4], 1 }
 0x47c   :  { %735 = vsyncpa [#allocation4 + $0x1], 1 }
 0x47d   :  { %736 = vsyncpa [#allocation7], 1 }
 0x47e   :  { %738 = vsyncpa [#allocation7 + $0x1], 1 }
 0x47f   :  { %739 = vsyncpa [#allocation10], 1 }
 0x480   :  { %740 = vsyncpa [#allocation5], 1 }
 0x481   :  { %742 = vsyncpa [#allocation5 + $0x1], 1 }

</bundles_post_ra>
